<compile_context>
chip_gen: v7x
topology: tpu7x:2x2x1
jax: 0.10.0
libtpu: 0.0.40
codegen_flags: <defaults>
</compile_context>

<pallas_src>
import functools

import jax
import jax.numpy as jnp
from jax.experimental import pallas as pl
from jax.experimental.pallas import tpu as pltpu


def _round_up(x: int, m: int) -> int:
    return ((x + m - 1) // m) * m


def _default_gate_dtype():
    # bf16 VPU/EUP exists on v6e/v7x -> gate in bf16 there (halves vreg traffic
    # for the (2C, TILE_T) activation slabs); keep f32 on v5e and older.
    try:
        kind = jax.devices()[0].device_kind.lower()
    except Exception:
        return jnp.float32
    return jnp.bfloat16 if ("v6" in kind or "v7" in kind) else jnp.float32


def _vmem_capacity_bytes() -> int:
    try:
        info = pltpu.get_tpu_info()
        cap = getattr(info, "vmem_capacity_bytes", None)
        if cap:
            return int(cap)
    except Exception:
        pass
    return 64 << 20  # conservative fallback (v7x per-core VMEM)


def _residual_block_kernel(
    x_hbm,      # (B, C, Tp)  zero-padded input, left in HBM (pl.ANY)
    wg_ref,     # (K, 2C, C)  fused tanh|sigmoid dilated-conv weights (mm dtype)
    wout_ref,   # (2C or C, C) fused residual|skip (or just skip) 1x1 weights
    out_ref,    # (bb, C, TILE_T)
    skip_ref,   # (bb, C, TILE_T)
    win_buf,    # (2, bb, C, WIN_T) VMEM double buffer for the haloed x window
    dma_sem,    # (2,) DMA semaphores
    *,
    kernel_size: int,
    dilation: int,
    pad: int,
    halo_left: int,
    tile_t: int,
    win_t: int,
    num_t: int,
    bb: int,
    residual: bool,
    mm_dtype,
    gate_dtype,
):
    C = out_ref.shape[1]
    b0 = pl.program_id(0) * bb
    j = pl.program_id(1)
    slot = j % 2

    def window_copy(jj, s):
        t0 = pl.multiple_of(jj * tile_t, 128)
        return pltpu.make_async_copy(
            x_hbm.at[pl.ds(b0, bb), :, pl.ds(t0, win_t)],
            win_buf.at[s],
            dma_sem.at[s],
        )

    # First tile of each batch-group's time sweep fetches its own window; every
    # later tile was prefetched by the previous step.  The chain never crosses
    # the parallel batch axis, so megacore sharding of that axis stays safe.
    @pl.when(j == 0)
    def _():
        window_copy(j, slot).start()

    window_copy(j, slot).wait()

    @pl.when(j + 1 < num_t)
    def _():
        window_copy(j + 1, 1 - slot).start()

    cur = win_buf.at[slot]  # (bb, C, WIN_T) view of the current window

    for i in range(bb):  # bb is small & static; weights stay resident.
        # Dilated tanh+sigmoid conv: K accumulated (2C, C) @ (C, TILE_T)
        # matmuls straight off the window Ref (no concatenate/staging copy).
        acc = None
        for k in range(kernel_size):
            off = halo_left - pad + k * dilation  # static
            tap = cur[i, :, pl.ds(off, tile_t)].astype(mm_dtype)  # (C, TILE_T)
            part = jnp.dot(wg_ref[k], tap, preferred_element_type=jnp.float32)
            acc = part if acc is None else acc + part

        gated = (jnp.tanh(acc[:C].astype(gate_dtype))
                 * jax.nn.sigmoid(acc[C:].astype(gate_dtype)))  # (C, TILE_T)

        # Fused 1x1 residual+skip conv (or just skip): one matmul on `gated`.
        proj = jnp.dot(wout_ref[...], gated.astype(mm_dtype),
                       preferred_element_type=jnp.float32)

        if residual:
            # halo_left is a multiple of 128 -> lane-aligned plain load.
            x_res = cur[i, :, pl.ds(halo_left, tile_t)].astype(jnp.float32)
            out_ref[i] = (x_res + proj[:C]).astype(out_ref.dtype)
            skip_ref[i] = proj[C:].astype(skip_ref.dtype)
        else:
            out_ref[i] = gated.astype(out_ref.dtype)
            skip_ref[i] = proj.astype(skip_ref.dtype)


def residual_block_forward(
    x,            # (B, C, T)
    tanh_w,       # (C, C, K)  torch Conv1d.weight layout (out, in, k)
    sigmoid_w,    # (C, C, K)
    skip_w,       # (C, C, 1)
    residual_w,   # (C, C, 1) or None
    *,
    kernel_size: int,
    dilation: int,
    mm_dtype=jnp.bfloat16,
    gate_dtype=None,
):
    B, C, T = x.shape
    residual = residual_w is not None
    span = dilation * (kernel_size - 1)
    if span % 2 != 0:
        # The PyTorch module itself changes the sequence length (and the
        # residual add fails) in this case; refuse rather than silently
        # producing a different-length output.
        raise ValueError(
            "dilation * (kernel_size - 1) must be even for 'same'-length output")
    pad = span // 2

    if gate_dtype is None:
        gate_dtype = _default_gate_dtype()

    # Lane-dense time tiling for arbitrary T: pad T up to a multiple of a
    # 128-multiple tile (preferring 512 — ~85% of HBM roofline), slice back.
    tile_t = min(512, _round_up(T, 128))
    T_grid = _round_up(T, tile_t)
    num_t = T_grid // tile_t

    # Fold batch into the kernel when C is small so per-step overhead and
    # weight pushes amortize over bb batches per grid step.
    bb = 1
    for cand in (8, 4, 2):
        if B % cand == 0 and cand * C <= 128:
            bb = cand
            break
    num_bgroups = B // bb

    # Haloed input window layout.  halo_left is rounded to a lane multiple when
    # the residual read needs it, so that read is an aligned plain vld.
    halo_left = _round_up(pad, 128) if (residual and pad > 0) else pad
    halo = _round_up(halo_left + pad, 128) if pad > 0 else 0
    win_t = tile_t + halo
    Tp = (num_t - 1) * tile_t + win_t
    # TODO(synk): the wrapper-side jnp.pad costs one extra HBM read+write of x;
    # zero-filling the halo inside the kernel (clamped DMA + masked edge fill)
    # would remove it at the cost of considerably more edge-case logic.
    x_pad = jnp.pad(x, ((0, 0), (0, 0), (halo_left, Tp - halo_left - T)))

    # Fused weights: (K, 2C, C) with rows [0:C]=tanh, [C:2C]=sigmoid per tap k.
    wg = jnp.concatenate(
        [jnp.transpose(tanh_w, (2, 0, 1)), jnp.transpose(sigmoid_w, (2, 0, 1))],
        axis=1).astype(mm_dtype)
    if residual:
        w_out = jnp.concatenate([residual_w[:, :, 0], skip_w[:, :, 0]],
                                axis=0).astype(mm_dtype)
    else:
        w_out = skip_w[:, :, 0].astype(mm_dtype)
    wout_rows = w_out.shape[0]

    # VMEM budget scales with tile_t (not T); generation-aware clamp.
    itemsize = jnp.dtype(x.dtype).itemsize
    mm_itemsize = jnp.dtype(mm_dtype).itemsize
    vmem_est = (
        2 * bb * C * win_t * itemsize               # manual x window double buffer
        + 2 * 2 * bb * C * tile_t * itemsize        # out + skip double buffers
        + 2 * (wg.size + w_out.size) * mm_itemsize  # resident weights
        + (6 * C + wout_rows) * tile_t * 4          # f32 temporaries
    )
    vmem_cap = _vmem_capacity_bytes()
    vmem_limit = int(min(max(2 * vmem_est, 32 << 20), int(0.75 * vmem_cap)))

    cost = pl.CostEstimate(
        flops=int(2 * B * T_grid * (2 * C * kernel_size * C + wout_rows * C)),
        transcendentals=int(2 * B * C * T_grid),
        bytes_accessed=int(x_pad.size * itemsize
                           + (wg.size + w_out.size) * mm_itemsize
                           + 2 * B * C * T_grid * itemsize),
    )

    kernel = functools.partial(
        _residual_block_kernel,
        kernel_size=kernel_size, dilation=dilation, pad=pad,
        halo_left=halo_left, tile_t=tile_t, win_t=win_t, num_t=num_t, bb=bb,
        residual=residual, mm_dtype=mm_dtype, gate_dtype=gate_dtype,
    )

    out, skip = pl.pallas_call(
        kernel,
        out_shape=(jax.ShapeDtypeStruct((B, C, T_grid), x.dtype),
                   jax.ShapeDtypeStruct((B, C, T_grid), x.dtype)),
        grid_spec=pltpu.PrefetchScalarGridSpec(
            num_scalar_prefetch=0,
            grid=(num_bgroups, num_t),
            in_specs=[
                # x stays in HBM; the kernel DMAs haloed (bb, C, win_t) windows
                # itself, so VMEM footprint is O(C * tile_t), not O(C * T).
                pl.BlockSpec(memory_space=pl.ANY),
                pl.BlockSpec((kernel_size, 2 * C, C), lambda bg, j: (0, 0, 0)),
                pl.BlockSpec((wout_rows, C), lambda bg, j: (0, 0)),
            ],
            out_specs=[
                pl.BlockSpec((bb, C, tile_t), lambda bg, j: (bg, 0, j)),
                pl.BlockSpec((bb, C, tile_t), lambda bg, j: (bg, 0, j)),
            ],
            scratch_shapes=[
                pltpu.VMEM((2, bb, C, win_t), x.dtype),
                pltpu.SemaphoreType.DMA((2,)),
            ],
        ),
        compiler_params=pltpu.CompilerParams(
            # Batch groups may shard across TensorCores (v7x); the time axis
            # carries the manual double-buffer chain, so it stays sequential.
            dimension_semantics=("parallel", "arbitrary"),
            vmem_limit_bytes=vmem_limit,
        ),
        cost_estimate=cost,
    )(x_pad, wg, w_out)

    if T_grid != T:
        out, skip = out[:, :, :T], skip[:, :, :T]
    return out, skip


def _reference_forward(x, tanh_w, sigmoid_w, skip_w, residual_w,
                       *, kernel_size, dilation):
    """Pure-JAX reference matching torch.nn.Conv1d semantics (bias=False)."""
    pad = dilation * (kernel_size - 1) // 2
    dn = jax.lax.conv_dimension_numbers(x.shape, tanh_w.shape, ("NCH", "OIH", "NCH"))

    def conv(inp, w, padding, dil):
        return jax.lax.conv_general_dilated(
            inp, w, window_strides=(1,), padding=[(padding, padding)],
            rhs_dilation=(dil,), dimension_numbers=dn)

    t = jnp.tanh(conv(x, tanh_w, pad, dilation))
    s = jax.nn.sigmoid(conv(x, sigmoid_w, pad, dilation))
    g = t * s
    x_skip = conv(g, skip_w, 0, 1)
    if residual_w is not None:
        out = x + conv(g, residual_w, 0, 1)
    else:
        out = g
    return out, x_skip


if __name__ == "__main__":
    def run_case(B, C, T, kernel_size, dilation, residual, key):
        k_x, k_t, k_s, k_sk, k_r = jax.random.split(key, 5)
        x = jax.random.normal(k_x, (B, C, T), jnp.float32)
        tanh_w = jax.random.normal(k_t, (C, C, kernel_size), jnp.float32) * 0.1
        sigmoid_w = jax.random.normal(k_s, (C, C, kernel_size), jnp.float32) * 0.1
        skip_w = jax.random.normal(k_sk, (C, C, 1), jnp.float32) * 0.1
        residual_w = (
            jax.random.normal(k_r, (C, C, 1), jnp.float32) * 0.1 if residual else None
        )

        out, skip = residual_block_forward(
            x, tanh_w, sigmoid_w, skip_w, residual_w,
            kernel_size=kernel_size, dilation=dilation)
        jax.block_until_ready((out, skip))

        ref_out, ref_skip = _reference_forward(
            x, tanh_w, sigmoid_w, skip_w, residual_w,
            kernel_size=kernel_size, dilation=dilation)
        # bf16 MXU matmuls with f32 accumulation -> loosened tolerance vs f32 ref.
        assert jnp.allclose(out, ref_out, atol=2e-2, rtol=2e-2), "out mismatch"
        assert jnp.allclose(skip, ref_skip, atol=2e-2, rtol=2e-2), "skip mismatch"

    key = jax.random.PRNGKey(0)
    k1, k2, k3 = jax.random.split(key, 3)
    # Tiny shape consistent with the module: (batch, input_size, frame_length).
    run_case(B=2, C=8, T=16, kernel_size=3, dilation=2, residual=True, key=k1)
    # Non-128-divisible T with multiple time tiles: exercises the padded grid,
    # the manual double-buffered halo-window prefetch chain, and output slicing.
    run_case(B=2, C=8, T=700, kernel_size=3, dilation=4, residual=True, key=k2)
    # No-residual branch with a larger dilation halo.
    run_case(B=2, C=8, T=256, kernel_size=3, dilation=8, residual=False, key=k3)

    print("KERNEL_OK")
</pallas_src>

<mosaic_0001>
module attributes {stable_mosaic.version = 11 : i64} {
  func.func @_residual_block_kernel(%arg0: i32, %arg1: i32, %arg2: memref<2x8x384xf32, #tpu.memory_space<any>>, %arg3: memref<3x16x8xbf16, #tpu.memory_space<vmem>>, %arg4: memref<16x8xbf16, #tpu.memory_space<vmem>>, %arg5: memref<2x8x128xf32, #tpu.memory_space<vmem>>, %arg6: memref<2x8x128xf32, #tpu.memory_space<vmem>>, %arg7: memref<2x2x8x384xf32, #tpu.memory_space<vmem>>, %arg8: memref<2x!tpu.dma_semaphore, #tpu.memory_space<semaphore_mem>>) attributes {dimension_semantics = [#tpu.dimension_semantics<parallel>, #tpu.dimension_semantics<arbitrary>], iteration_bounds = array<i64: 1, 1>, scalar_prefetch = 0 : i64, scratch_operands = 2 : i64, tpu.core_type = #tpu.core_type<tc>, window_params = [{}, {pipeline_mode = #tpu.pipeline_mode<synchronous>, transform_indices = @transform_1, window_bounds = array<i64: 3, 16, 8>}, {pipeline_mode = #tpu.pipeline_mode<synchronous>, transform_indices = @transform_2, window_bounds = array<i64: 16, 8>}, {transform_indices = @transform_3, window_bounds = array<i64: 2, 8, 128>}, {transform_indices = @transform_4, window_bounds = array<i64: 2, 8, 128>}]} {
    %c2_i32 = arith.constant 2 : i32
    %0 = arith.muli %arg0, %c2_i32 : i32
    %c2_i32_0 = arith.constant 2 : i32
    %c0_i32 = arith.constant 0 : i32
    %1 = arith.cmpi eq, %c2_i32_0, %c0_i32 : i32
    %c1_i32 = arith.constant 1 : i32
    %2 = arith.select %1, %c1_i32, %c2_i32_0 : i32
    %3 = arith.remsi %arg1, %2 : i32
    %c0_i32_1 = arith.constant 0 : i32
    %4 = arith.cmpi ne, %3, %c0_i32_1 : i32
    %c0_i32_2 = arith.constant 0 : i32
    %5 = arith.cmpi slt, %3, %c0_i32_2 : i32
    %c0_i32_3 = arith.constant 0 : i32
    %6 = arith.cmpi slt, %2, %c0_i32_3 : i32
    %7 = arith.xori %5, %6 : i1
    %8 = arith.andi %7, %4 : i1
    %9 = arith.addi %3, %2 : i32
    %10 = arith.select %8, %9, %3 : i32
    %c0_i32_4 = arith.constant 0 : i32
    %11 = arith.cmpi eq, %arg1, %c0_i32_4 : i32
    %12 = arith.extui %11 : i1 to i32
    %c0_i32_5 = arith.constant 0 : i32
    %13 = arith.cmpi ne, %12, %c0_i32_5 : i32
    scf.if %13 {
      %c128_i32_98 = arith.constant 128 : i32
      %127 = arith.muli %arg1, %c128_i32_98 : i32
      %128 = tpu.assume_multiple %127, 128 : i32
      %c0_i32_99 = arith.constant 0 : i32
      %129 = tpu.memref_slice %arg2[%0, %c0_i32_99, %128] : memref<2x8x384xf32, #tpu.memory_space<any>> -> memref<2x8x384xf32, #tpu.memory_space<any>>
      %c0_i32_100 = arith.constant 0 : i32
      %c0_i32_101 = arith.constant 0 : i32
      %c0_i32_102 = arith.constant 0 : i32
      %130 = tpu.memref_slice %arg7[%10, %c0_i32_100, %c0_i32_101, %c0_i32_102] : memref<2x2x8x384xf32, #tpu.memory_space<vmem>> -> memref<1x2x8x384xf32, #tpu.memory_space<vmem>>
      %131 = tpu.memref_squeeze %130 : memref<1x2x8x384xf32, #tpu.memory_space<vmem>> -> memref<2x8x384xf32, #tpu.memory_space<vmem>>
      %132 = tpu.memref_slice %arg8[%10] : memref<2x!tpu.dma_semaphore, #tpu.memory_space<semaphore_mem>> -> memref<1x!tpu.dma_semaphore, #tpu.memory_space<semaphore_mem>>
      %133 = tpu.memref_squeeze %132 : memref<1x!tpu.dma_semaphore, #tpu.memory_space<semaphore_mem>> -> memref<!tpu.dma_semaphore, #tpu.memory_space<semaphore_mem>>
      tpu.enqueue_dma source(%129 : memref<2x8x384xf32, #tpu.memory_space<any>>) target(%131 : memref<2x8x384xf32, #tpu.memory_space<vmem>>) target_semaphore(%133 : memref<!tpu.dma_semaphore, #tpu.memory_space<semaphore_mem>>)
    } else {
    }
    %c128_i32 = arith.constant 128 : i32
    %14 = arith.muli %arg1, %c128_i32 : i32
    %15 = tpu.assume_multiple %14, 128 : i32
    %c0_i32_6 = arith.constant 0 : i32
    %16 = tpu.memref_slice %arg2[%0, %c0_i32_6, %15] : memref<2x8x384xf32, #tpu.memory_space<any>> -> memref<2x8x384xf32, #tpu.memory_space<any>>
    %c0_i32_7 = arith.constant 0 : i32
    %c0_i32_8 = arith.constant 0 : i32
    %c0_i32_9 = arith.constant 0 : i32
    %17 = tpu.memref_slice %arg7[%10, %c0_i32_7, %c0_i32_8, %c0_i32_9] : memref<2x2x8x384xf32, #tpu.memory_space<vmem>> -> memref<1x2x8x384xf32, #tpu.memory_space<vmem>>
    %18 = tpu.memref_squeeze %17 : memref<1x2x8x384xf32, #tpu.memory_space<vmem>> -> memref<2x8x384xf32, #tpu.memory_space<vmem>>
    %19 = tpu.memref_slice %arg8[%10] : memref<2x!tpu.dma_semaphore, #tpu.memory_space<semaphore_mem>> -> memref<1x!tpu.dma_semaphore, #tpu.memory_space<semaphore_mem>>
    %20 = tpu.memref_squeeze %19 : memref<1x!tpu.dma_semaphore, #tpu.memory_space<semaphore_mem>> -> memref<!tpu.dma_semaphore, #tpu.memory_space<semaphore_mem>>
    tpu.wait_dma2 semaphore(%20 : memref<!tpu.dma_semaphore, #tpu.memory_space<semaphore_mem>>) src(%16 : memref<2x8x384xf32, #tpu.memory_space<any>>) dst(%18 : memref<2x8x384xf32, #tpu.memory_space<vmem>>)
    %c1_i32_10 = arith.constant 1 : i32
    %21 = arith.addi %arg1, %c1_i32_10 : i32
    %c1_i32_11 = arith.constant 1 : i32
    %22 = arith.cmpi slt, %21, %c1_i32_11 : i32
    %23 = arith.extui %22 : i1 to i32
    %c0_i32_12 = arith.constant 0 : i32
    %24 = arith.cmpi ne, %23, %c0_i32_12 : i32
    scf.if %24 {
      %c1_i32_98 = arith.constant 1 : i32
      %127 = arith.addi %arg1, %c1_i32_98 : i32
      %c1_i32_99 = arith.constant 1 : i32
      %128 = arith.subi %c1_i32_99, %10 : i32
      %c128_i32_100 = arith.constant 128 : i32
      %129 = arith.muli %127, %c128_i32_100 : i32
      %130 = tpu.assume_multiple %129, 128 : i32
      %c0_i32_101 = arith.constant 0 : i32
      %131 = tpu.memref_slice %arg2[%0, %c0_i32_101, %130] : memref<2x8x384xf32, #tpu.memory_space<any>> -> memref<2x8x384xf32, #tpu.memory_space<any>>
      %c0_i32_102 = arith.constant 0 : i32
      %c0_i32_103 = arith.constant 0 : i32
      %c0_i32_104 = arith.constant 0 : i32
      %132 = tpu.memref_slice %arg7[%128, %c0_i32_102, %c0_i32_103, %c0_i32_104] : memref<2x2x8x384xf32, #tpu.memory_space<vmem>> -> memref<1x2x8x384xf32, #tpu.memory_space<vmem>>
      %133 = tpu.memref_squeeze %132 : memref<1x2x8x384xf32, #tpu.memory_space<vmem>> -> memref<2x8x384xf32, #tpu.memory_space<vmem>>
      %134 = tpu.memref_slice %arg8[%128] : memref<2x!tpu.dma_semaphore, #tpu.memory_space<semaphore_mem>> -> memref<1x!tpu.dma_semaphore, #tpu.memory_space<semaphore_mem>>
      %135 = tpu.memref_squeeze %134 : memref<1x!tpu.dma_semaphore, #tpu.memory_space<semaphore_mem>> -> memref<!tpu.dma_semaphore, #tpu.memory_space<semaphore_mem>>
      tpu.enqueue_dma source(%131 : memref<2x8x384xf32, #tpu.memory_space<any>>) target(%133 : memref<2x8x384xf32, #tpu.memory_space<vmem>>) target_semaphore(%135 : memref<!tpu.dma_semaphore, #tpu.memory_space<semaphore_mem>>)
    } else {
    }
    %c0_i32_13 = arith.constant 0 : i32
    %c0_i32_14 = arith.constant 0 : i32
    %c0_i32_15 = arith.constant 0 : i32
    %25 = tpu.memref_slice %arg7[%10, %c0_i32_13, %c0_i32_14, %c0_i32_15] : memref<2x2x8x384xf32, #tpu.memory_space<vmem>> -> memref<1x2x8x384xf32, #tpu.memory_space<vmem>>
    %26 = tpu.memref_squeeze %25 : memref<1x2x8x384xf32, #tpu.memory_space<vmem>> -> memref<2x8x384xf32, #tpu.memory_space<vmem>>
    %c0 = arith.constant 0 : index
    %c0_16 = arith.constant 0 : index
    %c126 = arith.constant 126 : index
    %27 = vector.load %26[%c0, %c0_16, %c126] : memref<2x8x384xf32, #tpu.memory_space<vmem>>, vector<1x8x128xf32>
    %28 = vector.shape_cast %27 : vector<1x8x128xf32> to vector<8x128xf32>
    %29 = arith.truncf %28 : vector<8x128xf32> to vector<8x128xbf16>
    %c0_17 = arith.constant 0 : index
    %c0_18 = arith.constant 0 : index
    %c0_19 = arith.constant 0 : index
    %30 = vector.load %arg3[%c0_17, %c0_18, %c0_19] : memref<3x16x8xbf16, #tpu.memory_space<vmem>>, vector<1x16x8xbf16>
    %31 = vector.shape_cast %30 : vector<1x16x8xbf16> to vector<16x8xbf16>
    %cst = arith.constant dense<0.000000e+00> : vector<16x128xf32>
    %32 = tpu.matmul %31, %29, %cst {dimension_numbers = #tpu.dot_dimension_numbers<[1], [0], [0], [1], [0, 0, 1, 1], [], []>} : vector<16x8xbf16>, vector<8x128xbf16>, vector<16x128xf32> -> vector<16x128xf32>
    %c0_i32_20 = arith.constant 0 : i32
    %c0_i32_21 = arith.constant 0 : i32
    %c0_i32_22 = arith.constant 0 : i32
    %33 = tpu.memref_slice %arg7[%10, %c0_i32_20, %c0_i32_21, %c0_i32_22] : memref<2x2x8x384xf32, #tpu.memory_space<vmem>> -> memref<1x2x8x384xf32, #tpu.memory_space<vmem>>
    %34 = tpu.memref_squeeze %33 : memref<1x2x8x384xf32, #tpu.memory_space<vmem>> -> memref<2x8x384xf32, #tpu.memory_space<vmem>>
    %c0_23 = arith.constant 0 : index
    %c0_24 = arith.constant 0 : index
    %c128 = arith.constant 128 : index
    %35 = vector.load %34[%c0_23, %c0_24, %c128] : memref<2x8x384xf32, #tpu.memory_space<vmem>>, vector<1x8x128xf32>
    %36 = vector.shape_cast %35 : vector<1x8x128xf32> to vector<8x128xf32>
    %37 = arith.truncf %36 : vector<8x128xf32> to vector<8x128xbf16>
    %c1 = arith.constant 1 : index
    %c0_25 = arith.constant 0 : index
    %c0_26 = arith.constant 0 : index
    %38 = vector.load %arg3[%c1, %c0_25, %c0_26] : memref<3x16x8xbf16, #tpu.memory_space<vmem>>, vector<1x16x8xbf16>
    %39 = vector.shape_cast %38 : vector<1x16x8xbf16> to vector<16x8xbf16>
    %cst_27 = arith.constant dense<0.000000e+00> : vector<16x128xf32>
    %40 = tpu.matmul %39, %37, %cst_27 {dimension_numbers = #tpu.dot_dimension_numbers<[1], [0], [0], [1], [0, 0, 1, 1], [], []>} : vector<16x8xbf16>, vector<8x128xbf16>, vector<16x128xf32> -> vector<16x128xf32>
    %41 = arith.addf %32, %40 : vector<16x128xf32>
    %c0_i32_28 = arith.constant 0 : i32
    %c0_i32_29 = arith.constant 0 : i32
    %c0_i32_30 = arith.constant 0 : i32
    %42 = tpu.memref_slice %arg7[%10, %c0_i32_28, %c0_i32_29, %c0_i32_30] : memref<2x2x8x384xf32, #tpu.memory_space<vmem>> -> memref<1x2x8x384xf32, #tpu.memory_space<vmem>>
    %43 = tpu.memref_squeeze %42 : memref<1x2x8x384xf32, #tpu.memory_space<vmem>> -> memref<2x8x384xf32, #tpu.memory_space<vmem>>
    %c0_31 = arith.constant 0 : index
    %c0_32 = arith.constant 0 : index
    %c130 = arith.constant 130 : index
    %44 = vector.load %43[%c0_31, %c0_32, %c130] : memref<2x8x384xf32, #tpu.memory_space<vmem>>, vector<1x8x128xf32>
    %45 = vector.shape_cast %44 : vector<1x8x128xf32> to vector<8x128xf32>
    %46 = arith.truncf %45 : vector<8x128xf32> to vector<8x128xbf16>
    %c2 = arith.constant 2 : index
    %c0_33 = arith.constant 0 : index
    %c0_34 = arith.constant 0 : index
    %47 = vector.load %arg3[%c2, %c0_33, %c0_34] : memref<3x16x8xbf16, #tpu.memory_space<vmem>>, vector<1x16x8xbf16>
    %48 = vector.shape_cast %47 : vector<1x16x8xbf16> to vector<16x8xbf16>
    %cst_35 = arith.constant dense<0.000000e+00> : vector<16x128xf32>
    %49 = tpu.matmul %48, %46, %cst_35 {dimension_numbers = #tpu.dot_dimension_numbers<[1], [0], [0], [1], [0, 0, 1, 1], [], []>} : vector<16x8xbf16>, vector<8x128xbf16>, vector<16x128xf32> -> vector<16x128xf32>
    %50 = arith.addf %41, %49 : vector<16x128xf32>
    %51 = vector.extract_strided_slice %50 {offsets = [0, 0], sizes = [8, 128], strides = [1, 1]} : vector<16x128xf32> to vector<8x128xf32>
    %52 = math.tanh %51 : vector<8x128xf32>
    %53 = vector.extract_strided_slice %50 {offsets = [8, 0], sizes = [8, 128], strides = [1, 1]} : vector<16x128xf32> to vector<8x128xf32>
    %54 = arith.negf %53 : vector<8x128xf32>
    %55 = math.exp %54 : vector<8x128xf32>
    %cst_36 = arith.constant 1.000000e+00 : f32
    %56 = vector.broadcast %cst_36 : f32 to vector<8x128xf32>
    %57 = arith.addf %56, %55 : vector<8x128xf32>
    %58 = arith.divf %56, %57 : vector<8x128xf32>
    %59 = arith.mulf %52, %58 : vector<8x128xf32>
    %c0_37 = arith.constant 0 : index
    %c0_38 = arith.constant 0 : index
    %60 = vector.load %arg4[%c0_37, %c0_38] : memref<16x8xbf16, #tpu.memory_space<vmem>>, vector<16x8xbf16>
    %61 = arith.truncf %59 : vector<8x128xf32> to vector<8x128xbf16>
    %cst_39 = arith.constant dense<0.000000e+00> : vector<16x128xf32>
    %62 = tpu.matmul %60, %61, %cst_39 {dimension_numbers = #tpu.dot_dimension_numbers<[1], [0], [0], [1], [0, 0, 1, 1], [], []>} : vector<16x8xbf16>, vector<8x128xbf16>, vector<16x128xf32> -> vector<16x128xf32>
    %c0_i32_40 = arith.constant 0 : i32
    %c0_i32_41 = arith.constant 0 : i32
    %c0_i32_42 = arith.constant 0 : i32
    %63 = tpu.memref_slice %arg7[%10, %c0_i32_40, %c0_i32_41, %c0_i32_42] : memref<2x2x8x384xf32, #tpu.memory_space<vmem>> -> memref<1x2x8x384xf32, #tpu.memory_space<vmem>>
    %64 = tpu.memref_squeeze %63 : memref<1x2x8x384xf32, #tpu.memory_space<vmem>> -> memref<2x8x384xf32, #tpu.memory_space<vmem>>
    %c0_43 = arith.constant 0 : index
    %c0_44 = arith.constant 0 : index
    %c128_45 = arith.constant 128 : index
    %65 = vector.load %64[%c0_43, %c0_44, %c128_45] : memref<2x8x384xf32, #tpu.memory_space<vmem>>, vector<1x8x128xf32>
    %66 = vector.shape_cast %65 : vector<1x8x128xf32> to vector<8x128xf32>
    %67 = vector.extract_strided_slice %62 {offsets = [0, 0], sizes = [8, 128], strides = [1, 1]} : vector<16x128xf32> to vector<8x128xf32>
    %68 = arith.addf %66, %67 : vector<8x128xf32>
    %c0_46 = arith.constant 0 : index
    %c0_47 = arith.constant 0 : index
    %c0_48 = arith.constant 0 : index
    %69 = vector.load %arg5[%c0_46, %c0_47, %c0_48] : memref<2x8x128xf32, #tpu.memory_space<vmem>>, vector<1x8x128xf32>
    %70 = vector.shape_cast %69 : vector<1x8x128xf32> to vector<8x128xf32>
    %71 = vector.shape_cast %68 : vector<8x128xf32> to vector<1x8x128xf32>
    tpu.vector_store %arg5[%c0_46, %c0_47, %c0_48], %71 {strides = array<i32>} : memref<2x8x128xf32, #tpu.memory_space<vmem>>, vector<1x8x128xf32>,
    %72 = vector.extract_strided_slice %62 {offsets = [8, 0], sizes = [8, 128], strides = [1, 1]} : vector<16x128xf32> to vector<8x128xf32>
    %c0_49 = arith.constant 0 : index
    %c0_50 = arith.constant 0 : index
    %c0_51 = arith.constant 0 : index
    %73 = vector.load %arg6[%c0_49, %c0_50, %c0_51] : memref<2x8x128xf32, #tpu.memory_space<vmem>>, vector<1x8x128xf32>
    %74 = vector.shape_cast %73 : vector<1x8x128xf32> to vector<8x128xf32>
    %75 = vector.shape_cast %72 : vector<8x128xf32> to vector<1x8x128xf32>
    tpu.vector_store %arg6[%c0_49, %c0_50, %c0_51], %75 {strides = array<i32>} : memref<2x8x128xf32, #tpu.memory_space<vmem>>, vector<1x8x128xf32>,
    %c0_i32_52 = arith.constant 0 : i32
    %c0_i32_53 = arith.constant 0 : i32
    %c0_i32_54 = arith.constant 0 : i32
    %76 = tpu.memref_slice %arg7[%10, %c0_i32_52, %c0_i32_53, %c0_i32_54] : memref<2x2x8x384xf32, #tpu.memory_space<vmem>> -> memref<1x2x8x384xf32, #tpu.memory_space<vmem>>
    %77 = tpu.memref_squeeze %76 : memref<1x2x8x384xf32, #tpu.memory_space<vmem>> -> memref<2x8x384xf32, #tpu.memory_space<vmem>>
    %c1_55 = arith.constant 1 : index
    %c0_56 = arith.constant 0 : index
    %c126_57 = arith.constant 126 : index
    %78 = vector.load %77[%c1_55, %c0_56, %c126_57] : memref<2x8x384xf32, #tpu.memory_space<vmem>>, vector<1x8x128xf32>
    %79 = vector.shape_cast %78 : vector<1x8x128xf32> to vector<8x128xf32>
    %80 = arith.truncf %79 : vector<8x128xf32> to vector<8x128xbf16>
    %c0_58 = arith.constant 0 : index
    %c0_59 = arith.constant 0 : index
    %c0_60 = arith.constant 0 : index
    %81 = vector.load %arg3[%c0_58, %c0_59, %c0_60] : memref<3x16x8xbf16, #tpu.memory_space<vmem>>, vector<1x16x8xbf16>
    %82 = vector.shape_cast %81 : vector<1x16x8xbf16> to vector<16x8xbf16>
    %cst_61 = arith.constant dense<0.000000e+00> : vector<16x128xf32>
    %83 = tpu.matmul %82, %80, %cst_61 {dimension_numbers = #tpu.dot_dimension_numbers<[1], [0], [0], [1], [0, 0, 1, 1], [], []>} : vector<16x8xbf16>, vector<8x128xbf16>, vector<16x128xf32> -> vector<16x128xf32>
    %c0_i32_62 = arith.constant 0 : i32
    %c0_i32_63 = arith.constant 0 : i32
    %c0_i32_64 = arith.constant 0 : i32
    %84 = tpu.memref_slice %arg7[%10, %c0_i32_62, %c0_i32_63, %c0_i32_64] : memref<2x2x8x384xf32, #tpu.memory_space<vmem>> -> memref<1x2x8x384xf32, #tpu.memory_space<vmem>>
    %85 = tpu.memref_squeeze %84 : memref<1x2x8x384xf32, #tpu.memory_space<vmem>> -> memref<2x8x384xf32, #tpu.memory_space<vmem>>
    %c1_65 = arith.constant 1 : index
    %c0_66 = arith.constant 0 : index
    %c128_67 = arith.constant 128 : index
    %86 = vector.load %85[%c1_65, %c0_66, %c128_67] : memref<2x8x384xf32, #tpu.memory_space<vmem>>, vector<1x8x128xf32>
    %87 = vector.shape_cast %86 : vector<1x8x128xf32> to vector<8x128xf32>
    %88 = arith.truncf %87 : vector<8x128xf32> to vector<8x128xbf16>
    %c1_68 = arith.constant 1 : index
    %c0_69 = arith.constant 0 : index
    %c0_70 = arith.constant 0 : index
    %89 = vector.load %arg3[%c1_68, %c0_69, %c0_70] : memref<3x16x8xbf16, #tpu.memory_space<vmem>>, vector<1x16x8xbf16>
    %90 = vector.shape_cast %89 : vector<1x16x8xbf16> to vector<16x8xbf16>
    %cst_71 = arith.constant dense<0.000000e+00> : vector<16x128xf32>
    %91 = tpu.matmul %90, %88, %cst_71 {dimension_numbers = #tpu.dot_dimension_numbers<[1], [0], [0], [1], [0, 0, 1, 1], [], []>} : vector<16x8xbf16>, vector<8x128xbf16>, vector<16x128xf32> -> vector<16x128xf32>
    %92 = arith.addf %83, %91 : vector<16x128xf32>
    %c0_i32_72 = arith.constant 0 : i32
    %c0_i32_73 = arith.constant 0 : i32
    %c0_i32_74 = arith.constant 0 : i32
    %93 = tpu.memref_slice %arg7[%10, %c0_i32_72, %c0_i32_73, %c0_i32_74] : memref<2x2x8x384xf32, #tpu.memory_space<vmem>> -> memref<1x2x8x384xf32, #tpu.memory_space<vmem>>
    %94 = tpu.memref_squeeze %93 : memref<1x2x8x384xf32, #tpu.memory_space<vmem>> -> memref<2x8x384xf32, #tpu.memory_space<vmem>>
    %c1_75 = arith.constant 1 : index
    %c0_76 = arith.constant 0 : index
    %c130_77 = arith.constant 130 : index
    %95 = vector.load %94[%c1_75, %c0_76, %c130_77] : memref<2x8x384xf32, #tpu.memory_space<vmem>>, vector<1x8x128xf32>
    %96 = vector.shape_cast %95 : vector<1x8x128xf32> to vector<8x128xf32>
    %97 = arith.truncf %96 : vector<8x128xf32> to vector<8x128xbf16>
    %c2_78 = arith.constant 2 : index
    %c0_79 = arith.constant 0 : index
    %c0_80 = arith.constant 0 : index
    %98 = vector.load %arg3[%c2_78, %c0_79, %c0_80] : memref<3x16x8xbf16, #tpu.memory_space<vmem>>, vector<1x16x8xbf16>
    %99 = vector.shape_cast %98 : vector<1x16x8xbf16> to vector<16x8xbf16>
    %cst_81 = arith.constant dense<0.000000e+00> : vector<16x128xf32>
    %100 = tpu.matmul %99, %97, %cst_81 {dimension_numbers = #tpu.dot_dimension_numbers<[1], [0], [0], [1], [0, 0, 1, 1], [], []>} : vector<16x8xbf16>, vector<8x128xbf16>, vector<16x128xf32> -> vector<16x128xf32>
    %101 = arith.addf %92, %100 : vector<16x128xf32>
    %102 = vector.extract_strided_slice %101 {offsets = [0, 0], sizes = [8, 128], strides = [1, 1]} : vector<16x128xf32> to vector<8x128xf32>
    %103 = math.tanh %102 : vector<8x128xf32>
    %104 = vector.extract_strided_slice %101 {offsets = [8, 0], sizes = [8, 128], strides = [1, 1]} : vector<16x128xf32> to vector<8x128xf32>
    %105 = arith.negf %104 : vector<8x128xf32>
    %106 = math.exp %105 : vector<8x128xf32>
    %cst_82 = arith.constant 1.000000e+00 : f32
    %107 = vector.broadcast %cst_82 : f32 to vector<8x128xf32>
    %108 = arith.addf %107, %106 : vector<8x128xf32>
    %109 = arith.divf %107, %108 : vector<8x128xf32>
    %110 = arith.mulf %103, %109 : vector<8x128xf32>
    %c0_83 = arith.constant 0 : index
    %c0_84 = arith.constant 0 : index
    %111 = vector.load %arg4[%c0_83, %c0_84] : memref<16x8xbf16, #tpu.memory_space<vmem>>, vector<16x8xbf16>
    %112 = arith.truncf %110 : vector<8x128xf32> to vector<8x128xbf16>
    %cst_85 = arith.constant dense<0.000000e+00> : vector<16x128xf32>
    %113 = tpu.matmul %111, %112, %cst_85 {dimension_numbers = #tpu.dot_dimension_numbers<[1], [0], [0], [1], [0, 0, 1, 1], [], []>} : vector<16x8xbf16>, vector<8x128xbf16>, vector<16x128xf32> -> vector<16x128xf32>
    %c0_i32_86 = arith.constant 0 : i32
    %c0_i32_87 = arith.constant 0 : i32
    %c0_i32_88 = arith.constant 0 : i32
    %114 = tpu.memref_slice %arg7[%10, %c0_i32_86, %c0_i32_87, %c0_i32_88] : memref<2x2x8x384xf32, #tpu.memory_space<vmem>> -> memref<1x2x8x384xf32, #tpu.memory_space<vmem>>
    %115 = tpu.memref_squeeze %114 : memref<1x2x8x384xf32, #tpu.memory_space<vmem>> -> memref<2x8x384xf32, #tpu.memory_space<vmem>>
    %c1_89 = arith.constant 1 : index
    %c0_90 = arith.constant 0 : index
    %c128_91 = arith.constant 128 : index
    %116 = vector.load %115[%c1_89, %c0_90, %c128_91] : memref<2x8x384xf32, #tpu.memory_space<vmem>>, vector<1x8x128xf32>
    %117 = vector.shape_cast %116 : vector<1x8x128xf32> to vector<8x128xf32>
    %118 = vector.extract_strided_slice %113 {offsets = [0, 0], sizes = [8, 128], strides = [1, 1]} : vector<16x128xf32> to vector<8x128xf32>
    %119 = arith.addf %117, %118 : vector<8x128xf32>
    %c1_92 = arith.constant 1 : index
    %c0_93 = arith.constant 0 : index
    %c0_94 = arith.constant 0 : index
    %120 = vector.load %arg5[%c1_92, %c0_93, %c0_94] : memref<2x8x128xf32, #tpu.memory_space<vmem>>, vector<1x8x128xf32>
    %121 = vector.shape_cast %120 : vector<1x8x128xf32> to vector<8x128xf32>
    %122 = vector.shape_cast %119 : vector<8x128xf32> to vector<1x8x128xf32>
    tpu.vector_store %arg5[%c1_92, %c0_93, %c0_94], %122 {strides = array<i32>} : memref<2x8x128xf32, #tpu.memory_space<vmem>>, vector<1x8x128xf32>,
    %123 = vector.extract_strided_slice %113 {offsets = [8, 0], sizes = [8, 128], strides = [1, 1]} : vector<16x128xf32> to vector<8x128xf32>
    %c1_95 = arith.constant 1 : index
    %c0_96 = arith.constant 0 : index
    %c0_97 = arith.constant 0 : index
    %124 = vector.load %arg6[%c1_95, %c0_96, %c0_97] : memref<2x8x128xf32, #tpu.memory_space<vmem>>, vector<1x8x128xf32>
    %125 = vector.shape_cast %124 : vector<1x8x128xf32> to vector<8x128xf32>
    %126 = vector.shape_cast %123 : vector<8x128xf32> to vector<1x8x128xf32>
    tpu.vector_store %arg6[%c1_95, %c0_96, %c0_97], %126 {strides = array<i32>} : memref<2x8x128xf32, #tpu.memory_space<vmem>>, vector<1x8x128xf32>,
    return
  }
  func.func @transform_1(%arg0: i32, %arg1: i32) -> (i32, i32, i32) {
    %c0_i32 = arith.constant 0 : i32
    %c0_i32_0 = arith.constant 0 : i32
    %c0_i32_1 = arith.constant 0 : i32
    %c0_i32_2 = arith.constant 0 : i32
    return %c0_i32, %c0_i32_0, %c0_i32_1 : i32, i32, i32
  }
  func.func @transform_2(%arg0: i32, %arg1: i32) -> (i32, i32) {
    %c0_i32 = arith.constant 0 : i32
    %c0_i32_0 = arith.constant 0 : i32
    %c0_i32_1 = arith.constant 0 : i32
    return %c0_i32, %c0_i32_0 : i32, i32
  }
  func.func @transform_3(%arg0: i32, %arg1: i32) -> (i32, i32, i32) {
    %c0_i32 = arith.constant 0 : i32
    %c0_i32_0 = arith.constant 0 : i32
    return %arg0, %c0_i32, %arg1 : i32, i32, i32
  }
  func.func @transform_4(%arg0: i32, %arg1: i32) -> (i32, i32, i32) {
    %c0_i32 = arith.constant 0 : i32
    %c0_i32_0 = arith.constant 0 : i32
    return %arg0, %c0_i32, %arg1 : i32, i32, i32
  }
}

</mosaic_0001>

<bundles_post_ra>
// kernel: tpu_custom_call.1
= control target key start
LH: loop header
LB: loop body
LE: loop exit
PB: predicated region body
PF: predicated region fallthrough
CT: control target
= control target key end

     0   :  { %10 = vsyncpa [#allocation5], 0  ;;  %s1112_s0 = inlined_call_operand.vmem [shape: f32[2,8,384], index: 0, kind: input, shape index: {}]   ;;  %s1113_s1 = inlined_call_operand.vmem [shape: bf16[3,16,8], index: 1, kind: input, shape index: {}]   ;;  %s1114_s2 = inlined_call_operand.vmem [shape: bf16[16,8], index: 2, kind: input, shape index: {}]   ;;  %s1115_s3 = inlined_call_operand.hbm [shape: f32[2,8,128], index: 3, kind: output, shape index: {0}]   ;;  %s1116_s4 = inlined_call_operand.hbm [shape: f32[2,8,128], index: 4, kind: output, shape index: {1}]  }
   0x1   :  { %11 = vsyncpa [#allocation7], 0  ;;  %v73_v0 = vld [vmem:[%s1112_s0] sm:$0xff]  ;;  %v991_v1 = vld [vmem:[%s1112_s0 + $0x8] sm:$0xff] }
   0x2   :  { %v77_v2 = vld [vmem:[%s1112_s0 + $0x10] sm:$0xff]  ;;  %v79_v3 = vld [vmem:[%s1112_s0 + $0x18] sm:$0xff]  ;;  %v1002_v4 = vld [vmem:[%s1112_s0 + $0x20] sm:$0xff] }
   0x3   :  { %v83_v5 = vld [vmem:[%s1112_s0 + $0x28] sm:$0xff] }
   0x4   :  { %92 = vsyncadd [#allocation3], 768  ;;  %v174_v6 = vpack.c.bf16 %v73_v0, %v73_v0  ;;  %v175_v7 = vpack.c.bf16 %v991_v1, %v991_v1 }
   0x5   :  { %946 = dma.done.wait [#allocation3], 768 }
   0x6   :  { %947 = vsyncadd [#allocation3], 4294966528  ;;  %v952_v8 = vmov 0.0   ;;  %vm190_vm0 = vcmask 1043456   ;;  %s953_s27 = smov 2   ;;  %s954_s28 = smov 126   ;;  %v298_v9 = vpack.c.bf16 %v77_v2, %v77_v2  ;;  %v434_v12 = vpack.c.bf16 %v1002_v4, %v1002_v4 }
   0x7   :  { %810 = vmatprep.subr.bf16.mxu0 %v952_v8  ;;  %828 = vmatprep.subr.bf16.mxu1 %v952_v8  ;;  %v192_v10 = vsel %vm190_vm0, %v175_v7, 0  ;;  %vm955_vm1 = vmmov 0   ;;  %vm186_vm2 = vcmask 64512   ;;  %v882_v11 = vld [vmem:[%s1113_s1 + $0x8] sm:$0xff]   ;;  %v433_v13 = vpack.c.bf16 %v79_v3, %v79_v3  ;;  %v883_v22 = vld [vmem:[%s1113_s1] sm:$0xff]   ;;  %v884_v24 = vld [vmem:[%s1113_s1 + $0x10] sm:$0xff]  }
   0x8   :  { %242 = vrot.lane.b32.xlu0 %v174_v6, %s953_s27  ;;  %309 = vrot.lane.b32.xlu1 %v175_v7, %s954_s28  ;;  %v553_v14 = vpack.c.bf16 %v83_v5, %v83_v5  ;;  %vm246_vm3 = vcmask 15360   ;;  %vm313_vm4 = vcmask 1031168   ;;  %v885_v37 = vld [vmem:[%s1114_s2] sm:$0xff]   ;;  %v448_v38 = vsel %vm190_vm0, %v434_v12, 0  ;;  %v886_v42 = vld [vmem:[%s1113_s1 + $0x8] sm:$0xff]   ;;  %s956_s17 = smov [#allocation4]  }
   0x9   :  { %811 = vmatpush3.bf16.msra.mxu0 %v192_v10  ;;  %812 = vmatprep.mubr.msk.bf16.mxu0 %vm955_vm1, %v952_v8  ;;  %v887_v47 = vld [vmem:[%s1113_s1] sm:$0xff]   ;;  %v888_v49 = vld [vmem:[%s1113_s1 + $0x10] sm:$0xff]   ;;  %s690_s18 = sshll.u32 %s956_s17, 4  ;;  %s957_s19 = smov [#allocation6]   ;;  %s691_s18 = int_to_ptr.vmem [resolvable:$true] %s690_s18 }
   0xa   :  { %816 = vmatprep.subr.bf16.mxu0 %v952_v8  ;;  %830 = vmatprep.mubr.msk.bf16.mxu1 %vm955_vm1, %v952_v8  ;;  %v889_v3 = vld [vmem:[%s1114_s2] sm:$0xff]   ;;  %s702_s20 = sshll.u32 %s957_s19, 4  ;;  %s902_s21 = scalar_lea.vmem %s691_s18, 256  ;;  %s1081_s20 = int_to_ptr.vmem [resolvable:$true] %s702_s20 }
   0xb   :  { %p903_p0 = scmp.ne.s32.totalorder %s691_s18, %s902_s21  ;;  %p907_p1 = scmp.lt.s32.totalorder %s691_s18, %s691_s18 }
   0xc   :  { %244 = vrot.lane.b32.xlu0 %v175_v7, %s953_s27  ;;  %311 = vrot.lane.b32.xlu1 %v298_v9, %s954_s28  ;;  %p908_p2 = scmp.lt.s32.totalorder %s902_s21, %s902_s21 }
   0xd   :  { %813 = vmatmul.mubr.msk.bf16.vlgmr.msra.gmra.mrb[0].mxu0 %vm186_vm2, %v882_v11 }
   0xe   :  { %818 = vmatprep.mubr.msk.bf16.mxu0 %vm955_vm1, %v952_v8  ;;  %p909_p3 = por %p908_p2, %p907_p1 }
  0x10   :  { %500 = vrot.lane.b32.xlu1 %v434_v12, %s953_s27  ;;  %498 = vrot.lane.b32.xlu0 %v433_v13, %s953_s27  ;;  %p910_p4 = pnand %p909_p3, %p903_p0 }
  0x14   :  { %565 = vrot.lane.b32.xlu1 %v553_v14, %s954_s28  ;;  %563 = vrot.lane.b32.xlu0 %v434_v12, %s954_s28 }
  0x7a   :  { %v243_v15 = vpop.permute.xlu0 %242  ;;  %v310_v16 = vpop.permute.xlu1 %309 }
  0x7e   :  { %v245_v17 = vpop.permute.xlu0 %244  ;;  %v312_v18 = vpop.permute.xlu1 %311 }
  0x7f   :  { %v247_v19 = vsel %vm246_vm3, %v243_v15, %v245_v17  ;;  %v314_v20 = vsel %vm313_vm4, %v310_v16, %v312_v18 }
  0x80   :  { %v252_v21 = vsel %vm190_vm0, %v247_v19, 0  ;;  %v319_v23 = vsel %vm190_vm0, %v314_v20, 0 }
  0x81   :  { %817 = vmatpush3.bf16.msra.mxu0 %v252_v21 }
  0x82   :  { %822 = vmatprep.subr.bf16.mxu0 %v952_v8  ;;  %v501_v39 = vpop.permute.xlu1 %500  ;;  %v499_v40 = vpop.permute.xlu0 %498 }
  0x83   :  { %v502_v41 = vsel %vm246_vm3, %v499_v40, %v501_v39 }
  0x84   :  { %819 = vmatmul.mubr.msk.bf16.vlgmr.msra.gmra.mrb[0].mxu0 %vm186_vm2, %v883_v22  ;;  %v507_v43 = vsel %vm190_vm0, %v502_v41, 0 }
  0x85   :  { %823 = vmatpush3.bf16.msra.mxu0 %v319_v23  ;;  %824 = vmatprep.mubr.msk.bf16.mxu0 %vm955_vm1, %v952_v8 }
  0x86   :  { %852 = vmatprep.subr.bf16.mxu0 %v952_v8  ;;  %v566_v44 = vpop.permute.xlu1 %565  ;;  %v564_v45 = vpop.permute.xlu0 %563 }
  0x87   :  { %v567_v46 = vsel %vm313_vm4, %v564_v45, %v566_v44 }
  0x88   :  { %v572_v48 = vsel %vm190_vm0, %v567_v46, 0 }
  0x90   :  { %825 = vmatmul.mubr.msk.bf16.vlgmr.msra.gmra.mrb[0].mxu0 %vm186_vm2, %v884_v24 }
  0x91   :  { %854 = vmatprep.mubr.msk.bf16.mxu0 %vm955_vm1, %v952_v8 }
 0x163   :  { %v355_v25 = vpop.f32.mrb[0].mxu0 }
 0x164   :  { %v826_v26 = vpop.f32.mrb[1].mxu0 }
 0x165   :  { %v358_v27 = vpop.f32.mrb[2].mxu0 }
 0x166   :  { %v776_v28 = vmul.f32 -1.442695, %v358_v27  ;;  %v827_v29 = vpop.f32.mrb[3].mxu0 }
 0x168   :  { %890 = vpow2.f32 %v776_v28 }
 0x169   :  { %892 = vtanh.f32 %v355_v25 }
 0x172   :  { %v891_v30 = vpop.eup %890 }
 0x173   :  { %v368_v31 = vadd.f32 1.0, %v891_v30  ;;  %v893_v32 = vpop.eup %892 }
 0x175   :  { %894 = vrcp.f32 %v368_v31 }
 0x17f   :  { %v895_v33 = vpop.eup %894 }
 0x180   :  { %v371_v34 = vmul.f32 %v895_v33, %v893_v32 }
 0x182   :  { %v374_v35 = vpack.c.bf16 %v371_v34, %v371_v34 }
 0x184   :  { %v384_v36 = vsel %vm190_vm0, %v374_v35, 0 }
 0x185   :  { %829 = vmatpush3.bf16.msra.mxu1 %v384_v36 }
 0x186   :  { %834 = vmatprep.subr.bf16.mxu1 %v952_v8 }
 0x188   :  { %831 = vmatmul.mubr.msk.bf16.vlgmr.msra.gmra.mrb[0].mxu1 %vm186_vm2, %v885_v37 }
 0x189   :  { %835 = vmatpush3.bf16.msra.mxu1 %v448_v38  ;;  %836 = vmatprep.mubr.msk.bf16.mxu1 %vm955_vm1, %v952_v8 }
 0x18a   :  { %840 = vmatprep.subr.bf16.mxu1 %v952_v8 }
 0x190   :  { %837 = vmatmul.mubr.msk.bf16.vlgmr.msra.gmra.mrb[4].mxu1 %vm186_vm2, %v886_v42 }
 0x191   :  { %841 = vmatpush3.bf16.msra.mxu1 %v507_v43  ;;  %842 = vmatprep.mubr.msk.bf16.mxu1 %vm955_vm1, %v952_v8 }
 0x192   :  { %846 = vmatprep.subr.bf16.mxu1 %v952_v8 }
 0x19c   :  { %843 = vmatmul.mubr.msk.bf16.vlgmr.msra.gmra.mrb[4].mxu1 %vm186_vm2, %v887_v47 }
 0x19d   :  { %847 = vmatpush3.bf16.msra.mxu1 %v572_v48  ;;  %848 = vmatprep.mubr.msk.bf16.mxu1 %vm955_vm1, %v952_v8 }
 0x1a8   :  { %849 = vmatmul.mubr.msk.bf16.vlgmr.msra.gmra.mrb[4].mxu1 %vm186_vm2, %v888_v49 }
 0x25b   :  { %v420_v50 = vpop.f32.mrb[0].mxu1 }
 0x25c   :  { %v427_v51 = vadd.f32 %v420_v50, %v991_v1  ;;  %v832_v52 = vpop.f32.mrb[1].mxu1 }
 0x25d   :  { %v423_v53 = vpop.f32.mrb[2].mxu1 }
 0x25e   :  { %428 = vst [vmem:[#allocation4] sm:$0xff] %v427_v51  ;;  %429 = vst [vmem:[#allocation6] sm:$0xff] %v423_v53  ;;  %v833_v54 = vpop.f32.mrb[3].mxu1 }
 0x27b   :  { %v608_v55 = vpop.f32.mrb[4].mxu1 }
 0x27c   :  { %v850_v56 = vpop.f32.mrb[5].mxu1 }
 0x27d   :  { %v611_v57 = vpop.f32.mrb[6].mxu1 }
 0x27e   :  { %v789_v58 = vmul.f32 -1.442695, %v611_v57  ;;  %v851_v59 = vpop.f32.mrb[7].mxu1 }
 0x280   :  { %896 = vpow2.f32 %v789_v58 }
 0x281   :  { %898 = vtanh.f32 %v608_v55 }
 0x28a   :  { %v897_v60 = vpop.eup %896 }
 0x28b   :  { %v621_v61 = vadd.f32 1.0, %v897_v60  ;;  %v899_v62 = vpop.eup %898 }
 0x28d   :  { %900 = vrcp.f32 %v621_v61 }
 0x297   :  { %v901_v63 = vpop.eup %900 }
 0x298   :  { %v624_v0 = vmul.f32 %v901_v63, %v899_v62 }
 0x29a   :  { %v627_v2 = vpack.c.bf16 %v624_v0, %v624_v0 }
 0x29c   :  { %v637_v1 = vsel %vm190_vm0, %v627_v2, 0 }
 0x29d   :  { %853 = vmatpush3.bf16.msra.mxu0 %v637_v1 }
 0x2a0   :  { %855 = vmatmul.mubr.msk.bf16.vlgmr.msra.gmra.mrb[4].mxu0 %vm186_vm2, %v889_v3 }
 0x373   :  { %v673_v5 = vpop.f32.mrb[4].mxu0 }
 0x374   :  { %v680_v6 = vadd.f32 %v673_v5, %v1002_v4  ;;  %v856_v7 = vpop.f32.mrb[5].mxu0 }
 0x375   :  { %v676_v8 = vpop.f32.mrb[6].mxu0 }
 0x376   :  { %682 = vst [vmem:[#allocation4 + $0x8] sm:$0xff] %v680_v6  ;;  %684 = vst [vmem:[#allocation6 + $0x8] sm:$0xff] %v676_v8  ;;  %v857_v9 = vpop.f32.mrb[7].mxu0 }
 0x377   :  { %913 = shalt.err (!%p910_p4)
}
 0x378   :  { %s914_s23 = scalar_lea.hbm %s1115_s3, 256 }
 0x379   :  { %p915_p5 = scmp.ne.s32.totalorder %s1115_s3, %s914_s23  ;;  %p918_p6 = scmp.lt.u32.totalorder %s914_s23, %s1115_s3 }
 0x37b   :  { %p920_p7 = pnand %p918_p6, %p915_p5 }
 0x37d   :  { %923 = shalt.err (!%p920_p7)
}
 0x37e   :  { %s958_s28 = smov 128   ;;  %s959_s0 = smov 8  }
 0x37f   :  { %696 = dma.vmem_to_hbm [thread:$0]  %s691_s18, 256, %s1115_s3, [#allocation5], %s958_s28, %s958_s28, %s959_s0  }
 0x380   :  { %s924_s5 = scalar_lea.vmem %s1081_s20, 256  ;;  %p929_p9 = scmp.lt.s32.totalorder %s1081_s20, %s1081_s20 }
 0x381   :  { %p925_p8 = scmp.ne.s32.totalorder %s1081_s20, %s924_s5  ;;  %p930_p10 = scmp.lt.s32.totalorder %s924_s5, %s924_s5 }
 0x383   :  { %p931_p11 = por %p930_p10, %p929_p9 }
 0x385   :  { %p932_p12 = pnand %p931_p11, %p925_p8 }
 0x387   :  { %935 = shalt.err (!%p932_p12)
}
 0x388   :  { %s936_s8 = scalar_lea.hbm %s1116_s4, 256 }
 0x389   :  { %p937_p13 = scmp.ne.s32.totalorder %s1116_s4, %s936_s8  ;;  %p940_p0 = scmp.lt.u32.totalorder %s936_s8, %s1116_s4 }
 0x38b   :  { %p942_p1 = pnand %p940_p0, %p937_p13 }
 0x38d   :  { %945 = shalt.err (!%p942_p1)
}
 0x38e   :  { %708 = dma.vmem_to_hbm [thread:$0]  %s1081_s20, 256, %s1116_s4, [#allocation7], %s958_s28, %s958_s28, %s959_s0  }
 0x38f   :  { %948 = dma.done.wait [#allocation5], 256  }
 0x390   :  { %949 = vsyncadd [#allocation5], 4294967040 }
 0x391   :  { %950 = dma.done.wait [#allocation7], 256  }
 0x392   :  { %951 = vsyncadd [#allocation7], 4294967040 }
 0x393   :  { %715 = vsyncpa [#allocation5], 1 }
 0x394   :  { %716 = vsyncpa [#allocation7], 1 }
 0x395   :  { %717 = vsyncmov [#allocation3] }
 0x398   :  { %s718_s14 = vpop.sfrf %717 }
 0x399   :  { %p792_p2 = scmp.ne.s32.totalorder %s718_s14, 0 }
 0x39b   :  { %722 = shalt.err (%p792_p2)  }
 0x39c   :  { %724 = vsyncmov [#allocation3 + $0x1] }
 0x39f   :  { %s725_s15 = vpop.sfrf %724 }
 0x3a0   :  { %p793_p3 = scmp.ne.s32.totalorder %s725_s15, 0 }
 0x3a2   :  { %729 = shalt.err (%p793_p3)  }

</bundles_post_ra>
